<compile_context>
chip_gen: v6e
topology: v6e:2x2x1
jax: 0.10.0
libtpu: 0.0.40
codegen_flags: <defaults>
</compile_context>

<pallas_src>
import jax
import jax.numpy as jnp
from jax import lax
from jax.experimental import pallas as pl
from jax.experimental.pallas import tpu as pltpu

# Layer dims of the PyTorch module: 20 -> 32 -> 64 -> 64 -> 64 -> 64 -> 32 -> 16 -> 1
LAYER_DIMS = [(20, 32), (32, 64), (64, 64), (64, 64), (64, 64), (64, 32), (32, 16), (16, 1)]
IN_DIM = LAYER_DIMS[0][0]
OUT_DIM = LAYER_DIMS[-1][1]
MAX_TILE_B = 1024   # rows per grid step (amortizes ~600-cycle per-step overhead)
CHUNK_B = 128       # inner row-strip: keeps l1/l2/l3 residuals near vreg-resident


def _round_up(n, m):
    return ((n + m - 1) // m) * m


def _choose_tile_b(B):
    """Batch tile: multiple of 8 (sublane), multiple of CHUNK_B when >CHUNK_B,
    and small enough that the grid has >=2 steps (v7x megacore) when B allows."""
    n_tiles = max(2, pl.cdiv(B, MAX_TILE_B))
    tile = _round_up(pl.cdiv(B, n_tiles), 8)
    if tile > CHUNK_B:
        tile = _round_up(tile, CHUNK_B)
    return min(tile, MAX_TILE_B)


def _mlp_kernel(alphas_ref,  # SMEM (3,) : PReLU slopes for layers 1, 4, 6
                x_ref,
                w1, b1, w2, b2, w3, b3, w4, b4, w5, b5, w6, b6, w7, b7, w8t, b8,
                o_ref):
    tile_b = x_ref.shape[0]
    chunk = min(CHUNK_B, tile_b)
    n_chunks = tile_b // chunk   # exact by construction in _choose_tile_b

    a1 = alphas_ref[0]
    a4 = alphas_ref[1]
    a6 = alphas_ref[2]

    def lin(h, w_ref, b_ref):
        # bf16 MXU inputs (weights already stored bf16), f32 accumulation + f32 bias.
        return jnp.dot(h.astype(jnp.bfloat16), w_ref[...],
                       preferred_element_type=jnp.float32) + b_ref[...]

    def prelu(v, a):
        return jnp.where(v >= 0, v, a * v)

    def compute_chunk(off):
        x = x_ref[pl.ds(off, chunk), :]
        l1 = prelu(lin(x, w1, b1), a1)
        l2 = jnp.maximum(lin(l1, w2, b2), 0.0)
        l3 = jnp.tanh(lin(l2, w3, b3))
        l4 = prelu(lin(l3, w4, b4), a4) + l2
        l5 = jnp.maximum(lin(l4, w5, b5), 0.0) + l3
        l6 = prelu(lin(l5, w6, b6), a6) + l1
        l7 = jax.nn.sigmoid(lin(l6, w7, b7))
        # Final 16->1 layer: VPU broadcast-mul + cross-lane reduce (f32), avoids
        # an N=1 MXU matmul. w8t is the transposed weight row-vector (1, 16).
        l8 = jax.nn.sigmoid(
            jnp.sum(l7 * w8t[...], axis=-1, keepdims=True) + b8[...])
        o_ref[pl.ds(off, chunk), :] = l8.astype(o_ref.dtype)

    if n_chunks == 1:
        compute_chunk(0)
    else:
        def body(c, carry):
            compute_chunk(pl.multiple_of(c * chunk, chunk))
            return carry
        lax.fori_loop(0, n_chunks, body, None, unroll=2)


def init_params(key):
    """Deterministic init mimicking nn.Linear default (uniform +-1/sqrt(fan_in))."""
    params = []
    for (fan_in, fan_out) in LAYER_DIMS:
        key, kw, kb = jax.random.split(key, 3)
        bound = 1.0 / jnp.sqrt(float(fan_in))
        w = jax.random.uniform(kw, (fan_in, fan_out), jnp.float32, -bound, bound)
        b = jax.random.uniform(kb, (1, fan_out), jnp.float32, -bound, bound)
        params.append((w, b))
    # PReLU default: single slope = 0.25 for layers 1, 4, 6.
    alphas = jnp.array([0.25, 0.25, 0.25], dtype=jnp.float32)
    return params, alphas


def prepare_params(params):
    """One-time prep: bf16 weights for the MXU layers (halves weight DMA/VMEM);
    final 16->1 layer stored transposed as an f32 (1,16) row-vector for the VPU."""
    flat = []
    n = len(params)
    for li, (w, b) in enumerate(params):
        if li == n - 1:
            flat.append(jnp.asarray(w, jnp.float32).T)        # (1, 16)
        else:
            flat.append(jnp.asarray(w).astype(jnp.bfloat16))  # (fan_in, fan_out)
        flat.append(jnp.asarray(b, jnp.float32))               # (1, fan_out)
    return tuple(flat)


@jax.jit
def network_forward(x, kparams, alphas):
    B = x.shape[0]
    tile_b = _choose_tile_b(B)
    grid = (pl.cdiv(B, tile_b),)   # partial last block handled by Pallas; no pad copy

    in_specs = [
        pl.BlockSpec(memory_space=pltpu.MemorySpace.SMEM),   # PReLU slopes (whole array)
        pl.BlockSpec((tile_b, IN_DIM), lambda i: (i, 0)),     # x: tiled over batch
    ]
    for p in kparams:
        # Constant block index -> parameters DMA'd once, VMEM-resident across steps.
        in_specs.append(pl.BlockSpec(p.shape, lambda i: (0, 0)))

    out = pl.pallas_call(
        _mlp_kernel,
        out_shape=jax.ShapeDtypeStruct((B, OUT_DIM), jnp.float32),
        grid=grid,
        in_specs=in_specs,
        out_specs=pl.BlockSpec((tile_b, OUT_DIM), lambda i: (i, 0)),
        compiler_params=pltpu.CompilerParams(
            dimension_semantics=("parallel",)),
    )(alphas, x, *kparams)
    return out


def ref_forward_f32(x, params, alphas):
    """Pure f32 reference (PyTorch semantics), highest matmul precision."""
    hp = jax.lax.Precision.HIGHEST

    def lin(h, i):
        w, b = params[i]
        return jnp.dot(h, w, precision=hp) + b

    prelu = lambda v, a: jnp.where(v >= 0, v, a * v)
    l1 = prelu(lin(x, 0), alphas[0])
    l2 = jax.nn.relu(lin(l1, 1))
    l3 = jnp.tanh(lin(l2, 2))
    l4 = prelu(lin(l3, 3), alphas[1]) + l2
    l5 = jax.nn.relu(lin(l4, 4)) + l3
    l6 = prelu(lin(l5, 5), alphas[2]) + l1
    l7 = jax.nn.sigmoid(lin(l6, 6))
    l8 = jax.nn.sigmoid(lin(l7, 7))
    return l8


def ref_forward_bf16(x, params, alphas):
    """Reference mirroring the kernel's bf16-input / f32-accumulate matmuls."""
    def lin(h, i):
        w, b = params[i]
        return jnp.dot(h.astype(jnp.bfloat16), w.astype(jnp.bfloat16),
                       preferred_element_type=jnp.float32) + b

    prelu = lambda v, a: jnp.where(v >= 0, v, a * v)
    l1 = prelu(lin(x, 0), alphas[0])
    l2 = jax.nn.relu(lin(l1, 1))
    l3 = jnp.tanh(lin(l2, 2))
    l4 = prelu(lin(l3, 3), alphas[1]) + l2
    l5 = jax.nn.relu(lin(l4, 4)) + l3
    l6 = prelu(lin(l5, 5), alphas[2]) + l1
    l7 = jax.nn.sigmoid(lin(l6, 6))
    w8, b8 = params[7]
    l8 = jax.nn.sigmoid(jnp.sum(l7 * w8[:, 0][None, :], axis=-1, keepdims=True) + b8)
    return l8


if __name__ == "__main__":
    key = jax.random.PRNGKey(0)
    key, kx, kx2, kp = jax.random.split(key, 4)

    params, alphas = init_params(kp)
    kparams = prepare_params(params)

    # Small batch (single grid step / single inner chunk).
    batch = 8
    x = jax.random.normal(kx, (batch, IN_DIM), dtype=jnp.float32)
    out = jax.block_until_ready(network_forward(x, kparams, alphas))
    assert out.shape == (batch, OUT_DIM), out.shape
    ref_tight = ref_forward_bf16(x, params, alphas)
    ref_f32 = ref_forward_f32(x, params, alphas)
    assert jnp.allclose(out, ref_tight, atol=1e-4, rtol=1e-4), \
        float(jnp.max(jnp.abs(out - ref_tight)))
    assert jnp.allclose(out, ref_f32, atol=3e-2, rtol=3e-2), \
        float(jnp.max(jnp.abs(out - ref_f32)))

    # Ragged larger batch: >=2 grid steps (megacore), partial last block (no pad
    # copy), and the inner 128-row sub-chunk loop.
    batch2 = 1000
    x2 = jax.random.normal(kx2, (batch2, IN_DIM), dtype=jnp.float32)
    out2 = jax.block_until_ready(network_forward(x2, kparams, alphas))
    assert out2.shape == (batch2, OUT_DIM), out2.shape
    ref2 = ref_forward_bf16(x2, params, alphas)
    assert jnp.allclose(out2, ref2, atol=1e-4, rtol=1e-4), \
        float(jnp.max(jnp.abs(out2 - ref2)))

    print("KERNEL_OK")
</pallas_src>

<mosaic_0001>
module attributes {stable_mosaic.version = 11 : i64} {
  func.func @_mlp_kernel(%arg0: i32, %arg1: memref<3xf32, #tpu.memory_space<smem>>, %arg2: memref<8x20xf32, #tpu.memory_space<vmem>>, %arg3: memref<20x32xbf16, #tpu.memory_space<vmem>>, %arg4: memref<1x32xf32, #tpu.memory_space<vmem>>, %arg5: memref<32x64xbf16, #tpu.memory_space<vmem>>, %arg6: memref<1x64xf32, #tpu.memory_space<vmem>>, %arg7: memref<64x64xbf16, #tpu.memory_space<vmem>>, %arg8: memref<1x64xf32, #tpu.memory_space<vmem>>, %arg9: memref<64x64xbf16, #tpu.memory_space<vmem>>, %arg10: memref<1x64xf32, #tpu.memory_space<vmem>>, %arg11: memref<64x64xbf16, #tpu.memory_space<vmem>>, %arg12: memref<1x64xf32, #tpu.memory_space<vmem>>, %arg13: memref<64x32xbf16, #tpu.memory_space<vmem>>, %arg14: memref<1x32xf32, #tpu.memory_space<vmem>>, %arg15: memref<32x16xbf16, #tpu.memory_space<vmem>>, %arg16: memref<1x16xf32, #tpu.memory_space<vmem>>, %arg17: memref<1x16xf32, #tpu.memory_space<vmem>>, %arg18: memref<1x1xf32, #tpu.memory_space<vmem>>, %arg19: memref<8x1xf32, #tpu.memory_space<vmem>>) attributes {dimension_semantics = [#tpu.dimension_semantics<parallel>], iteration_bounds = array<i64: 1>, scalar_prefetch = 0 : i64, scratch_operands = 0 : i64, tpu.core_type = #tpu.core_type<tc>, window_params = [{transform_indices = @transform_0, window_bounds = array<i64: 3>}, {transform_indices = @transform_1, window_bounds = array<i64: 8, 20>}, {pipeline_mode = #tpu.pipeline_mode<synchronous>, transform_indices = @transform_2, window_bounds = array<i64: 20, 32>}, {pipeline_mode = #tpu.pipeline_mode<synchronous>, transform_indices = @transform_3, window_bounds = array<i64: 1, 32>}, {pipeline_mode = #tpu.pipeline_mode<synchronous>, transform_indices = @transform_4, window_bounds = array<i64: 32, 64>}, {pipeline_mode = #tpu.pipeline_mode<synchronous>, transform_indices = @transform_5, window_bounds = array<i64: 1, 64>}, {pipeline_mode = #tpu.pipeline_mode<synchronous>, transform_indices = @transform_6, window_bounds = array<i64: 64, 64>}, {pipeline_mode = #tpu.pipeline_mode<synchronous>, transform_indices = @transform_7, window_bounds = array<i64: 1, 64>}, {pipeline_mode = #tpu.pipeline_mode<synchronous>, transform_indices = @transform_8, window_bounds = array<i64: 64, 64>}, {pipeline_mode = #tpu.pipeline_mode<synchronous>, transform_indices = @transform_9, window_bounds = array<i64: 1, 64>}, {pipeline_mode = #tpu.pipeline_mode<synchronous>, transform_indices = @transform_10, window_bounds = array<i64: 64, 64>}, {pipeline_mode = #tpu.pipeline_mode<synchronous>, transform_indices = @transform_11, window_bounds = array<i64: 1, 64>}, {pipeline_mode = #tpu.pipeline_mode<synchronous>, transform_indices = @transform_12, window_bounds = array<i64: 64, 32>}, {pipeline_mode = #tpu.pipeline_mode<synchronous>, transform_indices = @transform_13, window_bounds = array<i64: 1, 32>}, {pipeline_mode = #tpu.pipeline_mode<synchronous>, transform_indices = @transform_14, window_bounds = array<i64: 32, 16>}, {pipeline_mode = #tpu.pipeline_mode<synchronous>, transform_indices = @transform_15, window_bounds = array<i64: 1, 16>}, {pipeline_mode = #tpu.pipeline_mode<synchronous>, transform_indices = @transform_16, window_bounds = array<i64: 1, 16>}, {pipeline_mode = #tpu.pipeline_mode<synchronous>, transform_indices = @transform_17, window_bounds = array<i64: 1, 1>}, {transform_indices = @transform_18, window_bounds = array<i64: 8, 1>}]} {
    %c0 = arith.constant 0 : index
    %0 = memref.load %arg1[%c0] : memref<3xf32, #tpu.memory_space<smem>>
    %c1 = arith.constant 1 : index
    %1 = memref.load %arg1[%c1] : memref<3xf32, #tpu.memory_space<smem>>
    %c2 = arith.constant 2 : index
    %2 = memref.load %arg1[%c2] : memref<3xf32, #tpu.memory_space<smem>>
    %c0_0 = arith.constant 0 : index
    %c0_1 = arith.constant 0 : index
    %3 = vector.load %arg2[%c0_0, %c0_1] : memref<8x20xf32, #tpu.memory_space<vmem>>, vector<8x20xf32>
    %4 = arith.truncf %3 : vector<8x20xf32> to vector<8x20xbf16>
    %c0_2 = arith.constant 0 : index
    %c0_3 = arith.constant 0 : index
    %5 = vector.load %arg3[%c0_2, %c0_3] : memref<20x32xbf16, #tpu.memory_space<vmem>>, vector<20x32xbf16>
    %cst = arith.constant dense<0.000000e+00> : vector<8x32xf32>
    %6 = tpu.matmul %4, %5, %cst {dimension_numbers = #tpu.dot_dimension_numbers<[1], [0], [0], [1], [0, 0, 1, 1], [], []>} : vector<8x20xbf16>, vector<20x32xbf16>, vector<8x32xf32> -> vector<8x32xf32>
    %c0_4 = arith.constant 0 : index
    %c0_5 = arith.constant 0 : index
    %7 = vector.load %arg4[%c0_4, %c0_5] : memref<1x32xf32, #tpu.memory_space<vmem>>, vector<1x32xf32>
    %8 = vector.broadcast %7 : vector<1x32xf32> to vector<8x32xf32>
    %9 = arith.addf %6, %8 : vector<8x32xf32>
    %cst_6 = arith.constant 0.000000e+00 : f32
    %10 = vector.broadcast %cst_6 : f32 to vector<8x32xf32>
    %11 = arith.cmpf oge, %9, %10 : vector<8x32xf32>
    %12 = vector.broadcast %0 : f32 to vector<8x32xf32>
    %13 = arith.mulf %12, %9 : vector<8x32xf32>
    %14 = arith.select %11, %9, %13 : vector<8x32xi1>, vector<8x32xf32>
    %15 = arith.truncf %14 : vector<8x32xf32> to vector<8x32xbf16>
    %c0_7 = arith.constant 0 : index
    %c0_8 = arith.constant 0 : index
    %16 = vector.load %arg5[%c0_7, %c0_8] : memref<32x64xbf16, #tpu.memory_space<vmem>>, vector<32x64xbf16>
    %cst_9 = arith.constant dense<0.000000e+00> : vector<8x64xf32>
    %17 = tpu.matmul %15, %16, %cst_9 {dimension_numbers = #tpu.dot_dimension_numbers<[1], [0], [0], [1], [0, 0, 1, 1], [], []>} : vector<8x32xbf16>, vector<32x64xbf16>, vector<8x64xf32> -> vector<8x64xf32>
    %c0_10 = arith.constant 0 : index
    %c0_11 = arith.constant 0 : index
    %18 = vector.load %arg6[%c0_10, %c0_11] : memref<1x64xf32, #tpu.memory_space<vmem>>, vector<1x64xf32>
    %19 = vector.broadcast %18 : vector<1x64xf32> to vector<8x64xf32>
    %20 = arith.addf %17, %19 : vector<8x64xf32>
    %cst_12 = arith.constant 0.000000e+00 : f32
    %21 = vector.broadcast %cst_12 : f32 to vector<8x64xf32>
    %22 = arith.maximumf %20, %21 : vector<8x64xf32>
    %23 = arith.truncf %22 : vector<8x64xf32> to vector<8x64xbf16>
    %c0_13 = arith.constant 0 : index
    %c0_14 = arith.constant 0 : index
    %24 = vector.load %arg7[%c0_13, %c0_14] : memref<64x64xbf16, #tpu.memory_space<vmem>>, vector<64x64xbf16>
    %cst_15 = arith.constant dense<0.000000e+00> : vector<8x64xf32>
    %25 = tpu.matmul %23, %24, %cst_15 {dimension_numbers = #tpu.dot_dimension_numbers<[1], [0], [0], [1], [0, 0, 1, 1], [], []>} : vector<8x64xbf16>, vector<64x64xbf16>, vector<8x64xf32> -> vector<8x64xf32>
    %c0_16 = arith.constant 0 : index
    %c0_17 = arith.constant 0 : index
    %26 = vector.load %arg8[%c0_16, %c0_17] : memref<1x64xf32, #tpu.memory_space<vmem>>, vector<1x64xf32>
    %27 = vector.broadcast %26 : vector<1x64xf32> to vector<8x64xf32>
    %28 = arith.addf %25, %27 : vector<8x64xf32>
    %29 = math.tanh %28 : vector<8x64xf32>
    %30 = arith.truncf %29 : vector<8x64xf32> to vector<8x64xbf16>
    %c0_18 = arith.constant 0 : index
    %c0_19 = arith.constant 0 : index
    %31 = vector.load %arg9[%c0_18, %c0_19] : memref<64x64xbf16, #tpu.memory_space<vmem>>, vector<64x64xbf16>
    %cst_20 = arith.constant dense<0.000000e+00> : vector<8x64xf32>
    %32 = tpu.matmul %30, %31, %cst_20 {dimension_numbers = #tpu.dot_dimension_numbers<[1], [0], [0], [1], [0, 0, 1, 1], [], []>} : vector<8x64xbf16>, vector<64x64xbf16>, vector<8x64xf32> -> vector<8x64xf32>
    %c0_21 = arith.constant 0 : index
    %c0_22 = arith.constant 0 : index
    %33 = vector.load %arg10[%c0_21, %c0_22] : memref<1x64xf32, #tpu.memory_space<vmem>>, vector<1x64xf32>
    %34 = vector.broadcast %33 : vector<1x64xf32> to vector<8x64xf32>
    %35 = arith.addf %32, %34 : vector<8x64xf32>
    %cst_23 = arith.constant 0.000000e+00 : f32
    %36 = vector.broadcast %cst_23 : f32 to vector<8x64xf32>
    %37 = arith.cmpf oge, %35, %36 : vector<8x64xf32>
    %38 = vector.broadcast %1 : f32 to vector<8x64xf32>
    %39 = arith.mulf %38, %35 : vector<8x64xf32>
    %40 = arith.select %37, %35, %39 : vector<8x64xi1>, vector<8x64xf32>
    %41 = arith.addf %40, %22 : vector<8x64xf32>
    %42 = arith.truncf %41 : vector<8x64xf32> to vector<8x64xbf16>
    %c0_24 = arith.constant 0 : index
    %c0_25 = arith.constant 0 : index
    %43 = vector.load %arg11[%c0_24, %c0_25] : memref<64x64xbf16, #tpu.memory_space<vmem>>, vector<64x64xbf16>
    %cst_26 = arith.constant dense<0.000000e+00> : vector<8x64xf32>
    %44 = tpu.matmul %42, %43, %cst_26 {dimension_numbers = #tpu.dot_dimension_numbers<[1], [0], [0], [1], [0, 0, 1, 1], [], []>} : vector<8x64xbf16>, vector<64x64xbf16>, vector<8x64xf32> -> vector<8x64xf32>
    %c0_27 = arith.constant 0 : index
    %c0_28 = arith.constant 0 : index
    %45 = vector.load %arg12[%c0_27, %c0_28] : memref<1x64xf32, #tpu.memory_space<vmem>>, vector<1x64xf32>
    %46 = vector.broadcast %45 : vector<1x64xf32> to vector<8x64xf32>
    %47 = arith.addf %44, %46 : vector<8x64xf32>
    %cst_29 = arith.constant 0.000000e+00 : f32
    %48 = vector.broadcast %cst_29 : f32 to vector<8x64xf32>
    %49 = arith.maximumf %47, %48 : vector<8x64xf32>
    %50 = arith.addf %49, %29 : vector<8x64xf32>
    %51 = arith.truncf %50 : vector<8x64xf32> to vector<8x64xbf16>
    %c0_30 = arith.constant 0 : index
    %c0_31 = arith.constant 0 : index
    %52 = vector.load %arg13[%c0_30, %c0_31] : memref<64x32xbf16, #tpu.memory_space<vmem>>, vector<64x32xbf16>
    %cst_32 = arith.constant dense<0.000000e+00> : vector<8x32xf32>
    %53 = tpu.matmul %51, %52, %cst_32 {dimension_numbers = #tpu.dot_dimension_numbers<[1], [0], [0], [1], [0, 0, 1, 1], [], []>} : vector<8x64xbf16>, vector<64x32xbf16>, vector<8x32xf32> -> vector<8x32xf32>
    %c0_33 = arith.constant 0 : index
    %c0_34 = arith.constant 0 : index
    %54 = vector.load %arg14[%c0_33, %c0_34] : memref<1x32xf32, #tpu.memory_space<vmem>>, vector<1x32xf32>
    %55 = vector.broadcast %54 : vector<1x32xf32> to vector<8x32xf32>
    %56 = arith.addf %53, %55 : vector<8x32xf32>
    %cst_35 = arith.constant 0.000000e+00 : f32
    %57 = vector.broadcast %cst_35 : f32 to vector<8x32xf32>
    %58 = arith.cmpf oge, %56, %57 : vector<8x32xf32>
    %59 = vector.broadcast %2 : f32 to vector<8x32xf32>
    %60 = arith.mulf %59, %56 : vector<8x32xf32>
    %61 = arith.select %58, %56, %60 : vector<8x32xi1>, vector<8x32xf32>
    %62 = arith.addf %61, %14 : vector<8x32xf32>
    %63 = arith.truncf %62 : vector<8x32xf32> to vector<8x32xbf16>
    %c0_36 = arith.constant 0 : index
    %c0_37 = arith.constant 0 : index
    %64 = vector.load %arg15[%c0_36, %c0_37] : memref<32x16xbf16, #tpu.memory_space<vmem>>, vector<32x16xbf16>
    %cst_38 = arith.constant dense<0.000000e+00> : vector<8x16xf32>
    %65 = tpu.matmul %63, %64, %cst_38 {dimension_numbers = #tpu.dot_dimension_numbers<[1], [0], [0], [1], [0, 0, 1, 1], [], []>} : vector<8x32xbf16>, vector<32x16xbf16>, vector<8x16xf32> -> vector<8x16xf32>
    %c0_39 = arith.constant 0 : index
    %c0_40 = arith.constant 0 : index
    %66 = vector.load %arg16[%c0_39, %c0_40] : memref<1x16xf32, #tpu.memory_space<vmem>>, vector<1x16xf32>
    %67 = vector.broadcast %66 : vector<1x16xf32> to vector<8x16xf32>
    %68 = arith.addf %65, %67 : vector<8x16xf32>
    %69 = arith.negf %68 : vector<8x16xf32>
    %70 = math.exp %69 : vector<8x16xf32>
    %cst_41 = arith.constant 1.000000e+00 : f32
    %71 = vector.broadcast %cst_41 : f32 to vector<8x16xf32>
    %72 = arith.addf %71, %70 : vector<8x16xf32>
    %73 = arith.divf %71, %72 : vector<8x16xf32>
    %c0_42 = arith.constant 0 : index
    %c0_43 = arith.constant 0 : index
    %74 = vector.load %arg17[%c0_42, %c0_43] : memref<1x16xf32, #tpu.memory_space<vmem>>, vector<1x16xf32>
    %75 = vector.broadcast %74 : vector<1x16xf32> to vector<8x16xf32>
    %76 = arith.mulf %73, %75 : vector<8x16xf32>
    %cst_44 = arith.constant dense<0.000000e+00> : vector<8xf32>
    %77 = vector.multi_reduction <add>, %76, %cst_44 [1] : vector<8x16xf32> to vector<8xf32>
    %78 = vector.shape_cast %77 : vector<8xf32> to vector<8x1xf32>
    %c0_45 = arith.constant 0 : index
    %c0_46 = arith.constant 0 : index
    %79 = vector.load %arg18[%c0_45, %c0_46] : memref<1x1xf32, #tpu.memory_space<vmem>>, vector<1x1xf32>
    %80 = vector.broadcast %79 : vector<1x1xf32> to vector<8x1xf32>
    %81 = arith.addf %78, %80 : vector<8x1xf32>
    %82 = arith.negf %81 : vector<8x1xf32>
    %83 = math.exp %82 : vector<8x1xf32>
    %cst_47 = arith.constant 1.000000e+00 : f32
    %84 = vector.broadcast %cst_47 : f32 to vector<8x1xf32>
    %85 = arith.addf %84, %83 : vector<8x1xf32>
    %86 = arith.divf %84, %85 : vector<8x1xf32>
    %c0_48 = arith.constant 0 : index
    %c0_49 = arith.constant 0 : index
    %87 = vector.load %arg19[%c0_48, %c0_49] : memref<8x1xf32, #tpu.memory_space<vmem>>, vector<8x1xf32>
    tpu.vector_store %arg19[%c0_48, %c0_49], %86 {strides = array<i32>} : memref<8x1xf32, #tpu.memory_space<vmem>>, vector<8x1xf32>,
    return
  }
  func.func @transform_0(%arg0: i32) -> i32 {
    %c0_i32 = arith.constant 0 : i32
    %c0_i32_0 = arith.constant 0 : i32
    return %c0_i32 : i32
  }
  func.func @transform_1(%arg0: i32) -> (i32, i32) {
    %c0_i32 = arith.constant 0 : i32
    %c0_i32_0 = arith.constant 0 : i32
    return %arg0, %c0_i32 : i32, i32
  }
  func.func @transform_2(%arg0: i32) -> (i32, i32) {
    %c0_i32 = arith.constant 0 : i32
    %c0_i32_0 = arith.constant 0 : i32
    %c0_i32_1 = arith.constant 0 : i32
    return %c0_i32, %c0_i32_0 : i32, i32
  }
  func.func @transform_3(%arg0: i32) -> (i32, i32) {
    %c0_i32 = arith.constant 0 : i32
    %c0_i32_0 = arith.constant 0 : i32
    %c0_i32_1 = arith.constant 0 : i32
    return %c0_i32, %c0_i32_0 : i32, i32
  }
  func.func @transform_4(%arg0: i32) -> (i32, i32) {
    %c0_i32 = arith.constant 0 : i32
    %c0_i32_0 = arith.constant 0 : i32
    %c0_i32_1 = arith.constant 0 : i32
    return %c0_i32, %c0_i32_0 : i32, i32
  }
  func.func @transform_5(%arg0: i32) -> (i32, i32) {
    %c0_i32 = arith.constant 0 : i32
    %c0_i32_0 = arith.constant 0 : i32
    %c0_i32_1 = arith.constant 0 : i32
    return %c0_i32, %c0_i32_0 : i32, i32
  }
  func.func @transform_6(%arg0: i32) -> (i32, i32) {
    %c0_i32 = arith.constant 0 : i32
    %c0_i32_0 = arith.constant 0 : i32
    %c0_i32_1 = arith.constant 0 : i32
    return %c0_i32, %c0_i32_0 : i32, i32
  }
  func.func @transform_7(%arg0: i32) -> (i32, i32) {
    %c0_i32 = arith.constant 0 : i32
    %c0_i32_0 = arith.constant 0 : i32
    %c0_i32_1 = arith.constant 0 : i32
    return %c0_i32, %c0_i32_0 : i32, i32
  }
  func.func @transform_8(%arg0: i32) -> (i32, i32) {
    %c0_i32 = arith.constant 0 : i32
    %c0_i32_0 = arith.constant 0 : i32
    %c0_i32_1 = arith.constant 0 : i32
    return %c0_i32, %c0_i32_0 : i32, i32
  }
  func.func @transform_9(%arg0: i32) -> (i32, i32) {
    %c0_i32 = arith.constant 0 : i32
    %c0_i32_0 = arith.constant 0 : i32
    %c0_i32_1 = arith.constant 0 : i32
    return %c0_i32, %c0_i32_0 : i32, i32
  }
  func.func @transform_10(%arg0: i32) -> (i32, i32) {
    %c0_i32 = arith.constant 0 : i32
    %c0_i32_0 = arith.constant 0 : i32
    %c0_i32_1 = arith.constant 0 : i32
    return %c0_i32, %c0_i32_0 : i32, i32
  }
  func.func @transform_11(%arg0: i32) -> (i32, i32) {
    %c0_i32 = arith.constant 0 : i32
    %c0_i32_0 = arith.constant 0 : i32
    %c0_i32_1 = arith.constant 0 : i32
    return %c0_i32, %c0_i32_0 : i32, i32
  }
  func.func @transform_12(%arg0: i32) -> (i32, i32) {
    %c0_i32 = arith.constant 0 : i32
    %c0_i32_0 = arith.constant 0 : i32
    %c0_i32_1 = arith.constant 0 : i32
    return %c0_i32, %c0_i32_0 : i32, i32
  }
  func.func @transform_13(%arg0: i32) -> (i32, i32) {
    %c0_i32 = arith.constant 0 : i32
    %c0_i32_0 = arith.constant 0 : i32
    %c0_i32_1 = arith.constant 0 : i32
    return %c0_i32, %c0_i32_0 : i32, i32
  }
  func.func @transform_14(%arg0: i32) -> (i32, i32) {
    %c0_i32 = arith.constant 0 : i32
    %c0_i32_0 = arith.constant 0 : i32
    %c0_i32_1 = arith.constant 0 : i32
    return %c0_i32, %c0_i32_0 : i32, i32
  }
  func.func @transform_15(%arg0: i32) -> (i32, i32) {
    %c0_i32 = arith.constant 0 : i32
    %c0_i32_0 = arith.constant 0 : i32
    %c0_i32_1 = arith.constant 0 : i32
    return %c0_i32, %c0_i32_0 : i32, i32
  }
  func.func @transform_16(%arg0: i32) -> (i32, i32) {
    %c0_i32 = arith.constant 0 : i32
    %c0_i32_0 = arith.constant 0 : i32
    %c0_i32_1 = arith.constant 0 : i32
    return %c0_i32, %c0_i32_0 : i32, i32
  }
  func.func @transform_17(%arg0: i32) -> (i32, i32) {
    %c0_i32 = arith.constant 0 : i32
    %c0_i32_0 = arith.constant 0 : i32
    %c0_i32_1 = arith.constant 0 : i32
    return %c0_i32, %c0_i32_0 : i32, i32
  }
  func.func @transform_18(%arg0: i32) -> (i32, i32) {
    %c0_i32 = arith.constant 0 : i32
    %c0_i32_0 = arith.constant 0 : i32
    return %arg0, %c0_i32 : i32, i32
  }
}

</mosaic_0001>

<bundles_post_ra>
// kernel: network_forward.1
= control target key start
LH: loop header
LB: loop body
LE: loop exit
PB: predicated region body
PF: predicated region fallthrough
CT: control target
= control target key end

     0   :  { %s1399_s0 = inlined_call_operand.vmem [shape: f32[3], index: 0, kind: input, shape index: {}]   ;;  %s1400_s1 = inlined_call_operand.hbm [shape: f32[8,20], index: 1, kind: input, shape index: {}]   ;;  %s1401_s2 = inlined_call_operand.hbm [shape: bf16[20,32], index: 2, kind: input, shape index: {}]   ;;  %s1402_s3 = inlined_call_operand.hbm [shape: f32[1,32], index: 3, kind: input, shape index: {}]   ;;  %s1403_s4 = inlined_call_operand.hbm [shape: bf16[32,64], index: 4, kind: input, shape index: {}]   ;;  %s1404_s5 = inlined_call_operand.hbm [shape: f32[1,64], index: 5, kind: input, shape index: {}]   ;;  %s1405_s6 = inlined_call_operand.vmem [shape: bf16[64,64], index: 6, kind: input, shape index: {}]   ;;  %s1406_s7 = inlined_call_operand.hbm [shape: f32[1,64], index: 7, kind: input, shape index: {}]   ;;  %s1407_s8 = inlined_call_operand.vmem [shape: bf16[64,64], index: 8, kind: input, shape index: {}]   ;;  %s1408_s9 = inlined_call_operand.hbm [shape: f32[1,64], index: 9, kind: input, shape index: {}]   ;;  %s1409_s10 = inlined_call_operand.hbm [shape: bf16[64,64], index: 10, kind: input, shape index: {}]   ;;  %s1410_s11 = inlined_call_operand.vmem [shape: f32[1,64], index: 11, kind: input, shape index: {}]   ;;  %s1411_s12 = inlined_call_operand.vmem [shape: bf16[64,32], index: 12, kind: input, shape index: {}]   ;;  %s1412_s13 = inlined_call_operand.vmem [shape: f32[1,32], index: 13, kind: input, shape index: {}]   ;;  %s1413_s14 = inlined_call_operand.vmem [shape: bf16[32,16], index: 14, kind: input, shape index: {}]   ;;  %s1414_s15 = inlined_call_operand.vmem [shape: f32[1,16], index: 15, kind: input, shape index: {}]   ;;  %s1415_s16 = inlined_call_operand.vmem [shape: f32[1,16], index: 16, kind: input, shape index: {}]   ;;  %s1416_s17 = inlined_call_operand.<no memory space> [shape: f32[1,1], index: 17, kind: input, shape index: {}]   ;;  %s1417_s18 = inlined_call_operand.vmem [shape: f32[8,1], index: 18, kind: output, shape index: {}]  }
   0x1   :  { %1418 = sst [smem:[#allocation24_spill]] %s1399_s0  ;;  %v23_v0 = vstv %s1416_s17 }
   0x2   :  { %1419 = sst [smem:[#allocation25_spill]] %s1400_s1  ;;  %24 = vst [vmem:[#allocation2] sm:$0x1] %v23_v0 }
   0x3   :  { %1420 = sst [smem:[#allocation26_spill]] %s1401_s2 }
   0x4   :  { %25 = vsyncpa [#allocation5], 0 }
   0x5   :  { %26 = vsyncpa [#allocation4], 0 }
   0x6   :  { %27 = vsyncpa [#allocation8], 0 }
   0x7   :  { %28 = vsyncpa [#allocation11], 0 }
   0x8   :  { %29 = vsyncpa [#allocation14], 0 }
   0x9   :  { %30 = vsyncpa [#allocation17], 0  ;;  %s1148_s29 = smov [#allocation7]  }
   0xa   :  { %s56_s30 = sshll.u32 %s1148_s29, 4  ;;  %s57_s30 = int_to_ptr.vmem [resolvable:$true] %s56_s30 }
   0xb   :  { %s972_s0 = scalar_lea.vmem %s57_s30, 192  ;;  %p977_p1 = scmp.lt.s32.totalorder %s57_s30, %s57_s30 }
   0xc   :  { %p973_p0 = scmp.ne.s32.totalorder %s57_s30, %s972_s0  ;;  %p978_p2 = scmp.lt.s32.totalorder %s972_s0, %s972_s0 }
   0xe   :  { %p979_p3 = por %p978_p2, %p977_p1 }
  0x10   :  { %p980_p4 = pnand %p979_p3, %p973_p0 }
  0x12   :  { %983 = shalt.err (!%p980_p4)
}
  0x13   :  { %s1149_s19 = smov 64   ;;  %s1150_s1 = smov 4  }
  0x14   :  { %s1421_s21 = sld [smem:[#allocation26_spill]]  ;;  %s1151_s22 = smov [#allocation10]  }
  0x15   :  { %s78_s2 = sshll.u32 %s1151_s22, 4  ;;  %s1152_s23 = smov [#allocation13]   ;;  %s79_s2 = int_to_ptr.vmem [resolvable:$true] %s78_s2 }
  0x16   :  { %s103_s24 = sshll.u32 %s1152_s23, 4  ;;  %s992_s25 = scalar_lea.vmem %s79_s2, 256  ;;  %s104_s24 = int_to_ptr.vmem [resolvable:$true] %s103_s24 }
  0x17   :  { %p993_p5 = scmp.ne.s32.totalorder %s79_s2, %s992_s25  ;;  %p997_p6 = scmp.lt.s32.totalorder %s79_s2, %s79_s2 }
  0x18   :  { %p998_p7 = scmp.lt.s32.totalorder %s992_s25, %s992_s25 }
  0x1a   :  { %62 = dma.hbm_to_vmem [thread:$0]  %s1421_s21, 192, %s57_s30, [#allocation8], %s1149_s19, %s1149_s19, %s1150_s1  }
  0x1b   :  { %p999_p8 = por %p998_p7, %p997_p6 }
  0x1d   :  { %p1000_p9 = pnand %p999_p8, %p993_p5 }
  0x1f   :  { %1003 = shalt.err (!%p1000_p9)
}
  0x20   :  { %84 = dma.hbm_to_vmem [thread:$0]  %s1403_s4, 256, %s79_s2, [#allocation11], %s1149_s19, %s1149_s19, %s1150_s1  }
  0x21   :  { %s1422_s30 = sld [smem:[#allocation24_spill]]  ;;  %s1012_s17 = scalar_lea.vmem %s104_s24, 16 }
  0x22   :  { %p1013_p10 = scmp.ne.s32.totalorder %s104_s24, %s1012_s17  ;;  %s1016_s20 = scalar_lea.vmem %s104_s24, 32 }
  0x23   :  { %p1017_p11 = scmp.lt.s32.totalorder %s104_s24, %s104_s24  ;;  %p1018_p12 = scmp.lt.s32.totalorder %s1016_s20, %s1012_s17 }
  0x25   :  { %p1019_p13 = por %p1018_p12, %p1017_p11 }
  0x27   :  { %s37_s0 = sshll.u32 %s1422_s30, 4  ;;  %p1020_p0 = pnand %p1019_p13, %p1013_p10  ;;  %s38_s0 = int_to_ptr.vmem [resolvable:$true] %s37_s0 }
  0x29   :  { %1023 = shalt.err (!%p1020_p0)
}
  0x2a   :  { %106 = dma.hbm_to_vmem [thread:$0]  %s1406_s7, 16, %s104_s24, [#allocation14]  }
  0x2b   :  { %s1024_s23 = scalar_lea.vmem %s38_s0, 16  ;;  %p1029_p2 = scmp.lt.s32.totalorder %s38_s0, %s38_s0 }
  0x2c   :  { %p1025_p1 = scmp.ne.s32.totalorder %s38_s0, %s1024_s23  ;;  %p1030_p3 = scmp.lt.s32.totalorder %s1024_s23, %s1024_s23 }
  0x2e   :  { %p1031_p4 = por %p1030_p3, %p1029_p2 }
  0x30   :  { %p1032_p5 = pnand %p1031_p4, %p1025_p1 }
  0x32   :  { %1035 = shalt.err (!%p1032_p5)
}
  0x33   :  { %s1153_s4 = smov [#allocation3]   ;;  %s1154_s2 = smov [#allocation6]  }
  0x34   :  { %40 = dma.vmem_to_smem %s38_s0, 16, %s1153_s4, [#allocation5]  }
  0x35   :  { %s47_s25 = sshll.u32 %s1154_s2, 4  ;;  %s1155_s26 = smov [#allocation9]   ;;  %s48_s25 = int_to_ptr.vmem [resolvable:$true] %s47_s25 }
  0x36   :  { %s69_s27 = sshll.u32 %s1155_s26, 4  ;;  %s1044_s28 = scalar_lea.vmem %s48_s25, 128  ;;  %s70_s27 = int_to_ptr.vmem [resolvable:$true] %s69_s27 }
  0x37   :  { %p1045_p6 = scmp.ne.s32.totalorder %s48_s25, %s1044_s28  ;;  %p1049_p7 = scmp.lt.s32.totalorder %s48_s25, %s48_s25 }
  0x38   :  { %p1050_p8 = scmp.lt.s32.totalorder %s1044_s28, %s1044_s28 }
  0x3a   :  { %p1051_p9 = por %p1050_p8, %p1049_p7 }
  0x3c   :  { %p1052_p10 = pnand %p1051_p9, %p1045_p6 }
  0x3e   :  { %1055 = shalt.err (!%p1052_p10)
}
  0x3f   :  { %s1423_s29 = sld [smem:[#allocation25_spill]]  ;;  %s1064_s30 = scalar_lea.vmem %s70_s27, 16 }
  0x40   :  { %p1065_p11 = scmp.ne.s32.totalorder %s70_s27, %s1064_s30  ;;  %s1068_s0 = scalar_lea.vmem %s70_s27, 32 }
  0x41   :  { %p1069_p12 = scmp.lt.s32.totalorder %s70_s27, %s70_s27  ;;  %p1070_p13 = scmp.lt.s32.totalorder %s1068_s0, %s1064_s30 }
  0x43   :  { %p1071_p0 = por %p1070_p13, %p1069_p12 }
  0x45   :  { %50 = dma.hbm_to_vmem [thread:$0]  %s1423_s29, 128, %s48_s25, [#allocation4]  }
  0x46   :  { %p1072_p1 = pnand %p1071_p0, %p1065_p11 }
  0x48   :  { %1075 = shalt.err (!%p1072_p1)
}
  0x49   :  { %72 = dma.hbm_to_vmem [thread:$0]  %s1402_s3, 16, %s70_s27, [#allocation8]  }
  0x4a   :  { %s1156_s21 = smov [#allocation12]   ;;  %s1157_s23 = smov [#allocation15]  }
  0x4b   :  { %s91_s22 = sshll.u32 %s1156_s21, 4  ;;  %s115_s4 = sshll.u32 %s1157_s23, 4  ;;  %s92_s22 = int_to_ptr.vmem [resolvable:$true] %s91_s22  ;;  %s116_s4 = int_to_ptr.vmem [resolvable:$true] %s115_s4 }
  0x4c   :  { %s1084_s2 = scalar_lea.vmem %s92_s22, 16  ;;  %s1088_s25 = scalar_lea.vmem %s92_s22, 32 }
  0x4d   :  { %p1085_p2 = scmp.ne.s32.totalorder %s92_s22, %s1084_s2  ;;  %p1089_p3 = scmp.lt.s32.totalorder %s92_s22, %s92_s22 }
  0x4e   :  { %p1090_p4 = scmp.lt.s32.totalorder %s1088_s25, %s1084_s2 }
  0x50   :  { %p1091_p5 = por %p1090_p4, %p1089_p3 }
  0x52   :  { %p1092_p6 = pnand %p1091_p5, %p1085_p2 }
  0x54   :  { %1095 = shalt.err (!%p1092_p6)
}
  0x55   :  { %94 = dma.hbm_to_vmem [thread:$0]  %s1404_s5, 16, %s92_s22, [#allocation11]  }
  0x56   :  { %s1104_s7 = scalar_lea.vmem %s116_s4, 16  ;;  %s1108_s3 = scalar_lea.vmem %s116_s4, 32 }
  0x57   :  { %p1105_p7 = scmp.ne.s32.totalorder %s116_s4, %s1104_s7  ;;  %p1109_p8 = scmp.lt.s32.totalorder %s116_s4, %s116_s4 }
  0x58   :  { %p1110_p9 = scmp.lt.s32.totalorder %s1108_s3, %s1104_s7 }
  0x5a   :  { %p1111_p10 = por %p1110_p9, %p1109_p8 }
  0x5c   :  { %p1112_p11 = pnand %p1111_p10, %p1105_p7 }
  0x5e   :  { %1115 = shalt.err (!%p1112_p11)
}
  0x5f   :  { %118 = dma.hbm_to_vmem [thread:$0]  %s1408_s9, 16, %s116_s4, [#allocation14]  }
  0x60   :  { %s1158_s29 = smov [#allocation16]  }
  0x61   :  { %s124_s30 = sshll.u32 %s1158_s29, 4  ;;  %s125_s30 = int_to_ptr.vmem [resolvable:$true] %s124_s30 }
  0x62   :  { %s1124_s0 = scalar_lea.vmem %s125_s30, 512  ;;  %p1129_p13 = scmp.lt.s32.totalorder %s125_s30, %s125_s30 }
  0x63   :  { %p1125_p12 = scmp.ne.s32.totalorder %s125_s30, %s1124_s0  ;;  %p1130_p0 = scmp.lt.s32.totalorder %s1124_s0, %s1124_s0 }
  0x65   :  { %p1131_p1 = por %p1130_p0, %p1129_p13 }
  0x67   :  { %p1132_p2 = pnand %p1131_p1, %p1125_p12 }
  0x69   :  { %1135 = shalt.err (!%p1132_p2)
}
  0x6a   :  { %130 = dma.hbm_to_vmem [thread:$0]  %s1409_s10, 512, %s125_s30, [#allocation17], %s1149_s19, %s1149_s19, %s1150_s1  }
  0x6b   :  { %1136 = dma.done.wait [#allocation5], 16  }
  0x6c   :  { %1137 = vsyncadd [#allocation5], 4294967280 }
  0x6d   :  { %1138 = dma.done.wait [#allocation4], 128  }
  0x6e   :  { %1139 = vsyncadd [#allocation4], 4294967168 }
  0x6f   :  { %1140 = dma.done.wait [#allocation8], 208  }
  0x70   :  { %1141 = vsyncadd [#allocation8], 4294967088 }
  0x71   :  { %1142 = dma.done.wait [#allocation11], 272  }
  0x72   :  { %1143 = vsyncadd [#allocation11], 4294967024 }
  0x73   :  { %1144 = dma.done.wait [#allocation14], 32  }
  0x74   :  { %1145 = vsyncadd [#allocation14], 4294967264 }
  0x75   :  { %1146 = dma.done.wait [#allocation17], 512  }
  0x76   :  { %1147 = vsyncadd [#allocation17], 4294966784 }
  0x77   :  { %172 = sfence }
  0x78   :  { %v932_v1 = vld [vmem:[#allocation7 + $0x8] ss:$0 sps:$4 sm:$0x33]   ;;  %v1159_v2 = vmov 0.0   ;;  %vm202_vm0 = vcmask 1041408   ;;  %v933_v4 = vld [vmem:[#allocation7] sm:$0xff]  }
  0x79   :  { %847 = vmatprep.subr.bf16.mxu0 %v1159_v2  ;;  %855 = vmatprep.subr.bf16.mxu1 %v1159_v2  ;;  %v204_v3 = vsel %vm202_vm0, %v932_v1, 0  ;;  %vm1160_vm1 = vmmov 0   ;;  %v177_v5 = vld [vmem:[#allocation6] sm:$0xff]  ;;  %vm198_vm2 = vcmask 162816   ;;  %v935_v8 = vld [vmem:[#allocation10] sm:$0xff]   ;;  %s174_s20 = sld [smem:[#allocation3]] }
  0x7a   :  { %848 = vmatpush3.bf16.msra.mxu0 %v204_v3  ;;  %851 = vmatprep.mubr.msk.bf16.mxu0 %vm1160_vm1, %v1159_v2  ;;  %v178_v6 = vpack.c.bf16 %v177_v5, %v177_v5  ;;  %v934_v7 = vld [vmem:[#allocation10 + $0x8] sm:$0xff]   ;;  %v937_v10 = vld [vmem:[%s1405_s6 + $0x10] sm:$0xff]   ;;  %vm274_vm4 = vcmask 261120   ;;  %v938_v21 = vld [vmem:[%s1405_s6 + $0x8] sm:$0xff]   ;;  %vm359_vm5 = vcmask 523264   ;;  %s776_s0 = sld [smem:[#allocation3 + $0x1]] }
  0x7b   :  { %849 = vmatprep.subr.bf16.mxu0 %v1159_v2  ;;  %859 = vmatprep.mubr.msk.bf16.mxu1 %vm1160_vm1, %v1159_v2  ;;  %v936_v9 = vld [vmem:[%s1405_s6 + $0x18] sm:$0xff]   ;;  %v778_v11 = vld [vmem:[#allocation9] ss:$0 sm:$0xff]  ;;  %v939_v22 = vld [vmem:[%s1405_s6] sm:$0xff]   ;;  %vm746_vm8 = vcmask 130048   ;;  %vm764_vm9 = vcmask 7168  }
  0x7c   :  { %856 = vmatpush3.bf16.msra.mxu1 %v934_v7  ;;  %v782_v23 = vld [vmem:[#allocation12] ss:$0 sm:$0xff]  ;;  %v940_v31 = vld [vmem:[%s1407_s8 + $0x18] sm:$0xff]   ;;  %v941_v32 = vld [vmem:[%s1407_s8 + $0x10] sm:$0xff]  }
  0x7d   :  { %857 = vmatprep.subr.bf16.mxu1 %v1159_v2  ;;  %v942_v33 = vld [vmem:[%s1407_s8 + $0x8] sm:$0xff]   ;;  %v943_v34 = vld [vmem:[%s1407_s8] sm:$0xff]   ;;  %v946_v45 = vld [vmem:[#allocation16 + $0x8] sm:$0xff]  }
  0x7e   :  { %850 = vmatpush3.bf16.msra.mxu0 %v933_v4  ;;  %v944_v35 = vld [vmem:[#allocation16 + $0x18] sm:$0xff]   ;;  %v945_v36 = vld [vmem:[#allocation16 + $0x10] sm:$0xff]   ;;  %v947_v46 = vld [vmem:[#allocation16] sm:$0xff]  }
  0x7f   :  { %863 = vmatprep.subr.bf16.mxu0 %v1159_v2  ;;  %v247_v13 = vstv %s174_s20  ;;  %v786_v37 = vld [vmem:[#allocation13] ss:$0 sm:$0xff]  ;;  %v948_v47 = vld [vmem:[%s1411_s12 + $0x18] sm:$0xff]   ;;  %v949_v48 = vld [vmem:[%s1411_s12 + $0x10] sm:$0xff]  }
  0x80   :  { %858 = vmatpush3.bf16.msra.mxu1 %v935_v8  ;;  %v792_v49 = vld [vmem:[#allocation15] ss:$0 sm:$0xff]  ;;  %v488_v51 = vstv %s776_s0  ;;  %v951_v61 = vld [vmem:[%s1411_s12] sm:$0xff]  }
  0x81   :  { %852 = vmatmul.mubr.msk.bf16.vlgmr.msra.gmra.mxu0 %vm198_vm2, %v178_v6  ;;  %875 = vmatprep.subr.bf16.mxu1 %v1159_v2  ;;  %v950_v60 = vld [vmem:[%s1411_s12 + $0x8] sm:$0xff]   ;;  %v798_v62 = vld [vmem:[%s1410_s11] ss:$0 sm:$0xff]  ;;  %s777_s11 = sld [smem:[#allocation3 + $0x2]] }
  0x82   :  { %871 = vmatprep.mubr.msk.bf16.mxu0 %vm1160_vm1, %v1159_v2  ;;  %864 = vmatpush3.bf16.msra.mxu0 %v936_v9  ;;  %v952_v8 = vld [vmem:[%s1413_s14 + $0x8] sm:$0xff]   ;;  %v953_v9 = vld [vmem:[%s1413_s14] sm:$0xff]  }
  0x83   :  { %865 = vmatprep.subr.bf16.mxu0 %v1159_v2 }
  0x86   :  { %866 = vmatpush3.bf16.msra.mxu0 %v937_v10  ;;  %v804_v10 = vld [vmem:[%s1412_s13] ss:$0 sm:$0xff] }
  0x87   :  { %867 = vmatprep.subr.bf16.mxu0 %v1159_v2 }
  0x8a   :  { %868 = vmatpush3.bf16.msra.mxu0 %v938_v21  ;;  %v810_v21 = vld [vmem:[%s1414_s15] ss:$0 sm:$0xff] }
  0x8b   :  { %869 = vmatprep.subr.bf16.mxu0 %v1159_v2 }
  0x8e   :  { %870 = vmatpush3.bf16.msra.mxu0 %v939_v22 }
  0x8f   :  { %887 = vmatprep.subr.bf16.mxu0 %v1159_v2 }
 0x141   :  { %v240_v12 = vpop.f32.mrf.mxu0 }
 0x142   :  { %v241_v14 = vadd.f32 %v778_v11, %v240_v12  ;;  %v661_v12 = vstv %s777_s11 }
 0x143   :  { %v853_v15 = vpop.f32.mrf.mxu0 }
 0x144   :  { %vm246_vm3 = vcmp.ge.f32.partialorder %v241_v14, 0.0  ;;  %v248_v16 = vmul.f32 %v247_v13, %v241_v14 }
 0x145   :  { %v243_v17 = vpop.f32.mrf.mxu0 }
 0x146   :  { %v1315_v18 = vsel %vm246_vm3, %v241_v14, %v248_v16 }
 0x147   :  { %v250_v19 = vpack.c.bf16 %v1315_v18, %v1315_v18  ;;  %v854_v20 = vpop.f32.mrf.mxu0 }
 0x149   :  { %860 = vmatmul.mubr.msk.bf16.vlgmr.msra.gmra.mxu1 %vm274_vm4, %v250_v19 }
 0x14a   :  { %883 = vmatprep.mubr.msk.bf16.mxu1 %vm1160_vm1, %v1159_v2  ;;  %876 = vmatpush3.bf16.msra.mxu1 %v940_v31 }
 0x14b   :  { %877 = vmatprep.subr.bf16.mxu1 %v1159_v2 }
 0x14e   :  { %878 = vmatpush3.bf16.msra.mxu1 %v941_v32 }
 0x14f   :  { %879 = vmatprep.subr.bf16.mxu1 %v1159_v2 }
 0x152   :  { %880 = vmatpush3.bf16.msra.mxu1 %v942_v33  ;;  %v816_v33 = vld [vmem:[#allocation2] ss:$0 sm:$0xff] }
 0x153   :  { %881 = vmatprep.subr.bf16.mxu1 %v1159_v2 }
 0x156   :  { %882 = vmatpush3.bf16.msra.mxu1 %v943_v34 }
 0x157   :  { %899 = vmatprep.subr.bf16.mxu1 %v1159_v2 }
 0x209   :  { %v312_v24 = vpop.f32.mrf.mxu1 }
 0x20a   :  { %v313_v25 = vadd.f32 %v782_v23, %v312_v24 }
 0x20b   :  { %v861_v26 = vpop.f32.mrf.mxu1 }
 0x20c   :  { %v318_v27 = vmax.f32 %v313_v25, 0.0 }
 0x20d   :  { %v315_v28 = vpop.f32.mrf.mxu1 }
 0x20e   :  { %v319_v29 = vpack.c.bf16 %v318_v27, %v318_v27 }
 0x20f   :  { %v862_v30 = vpop.f32.mrf.mxu1 }
 0x210   :  { %872 = vmatmul.mubr.msk.bf16.vlgmr.msra.gmra.mxu0 %vm359_vm5, %v319_v29 }
 0x211   :  { %895 = vmatprep.mubr.msk.bf16.mxu0 %vm1160_vm1, %v1159_v2  ;;  %888 = vmatpush3.bf16.msra.mxu0 %v944_v35 }
 0x212   :  { %889 = vmatprep.subr.bf16.mxu0 %v1159_v2 }
 0x215   :  { %890 = vmatpush3.bf16.msra.mxu0 %v945_v36 }
 0x216   :  { %891 = vmatprep.subr.bf16.mxu0 %v1159_v2 }
 0x219   :  { %892 = vmatpush3.bf16.msra.mxu0 %v946_v45 }
 0x21a   :  { %893 = vmatprep.subr.bf16.mxu0 %v1159_v2 }
 0x21d   :  { %894 = vmatpush3.bf16.msra.mxu0 %v947_v46 }
 0x21e   :  { %911 = vmatprep.subr.bf16.mxu0 %v1159_v2 }
 0x2d0   :  { %v397_v38 = vpop.f32.mrf.mxu0 }
 0x2d1   :  { %v398_v39 = vadd.f32 %v786_v37, %v397_v38 }
 0x2d2   :  { %v873_v40 = vpop.f32.mrf.mxu0 }
 0x2d3   :  { %954 = vtanh.f32 %v398_v39 }
 0x2d4   :  { %v400_v41 = vpop.f32.mrf.mxu0 }
 0x2d6   :  { %v874_v42 = vpop.f32.mrf.mxu0 }
 0x2e0   :  { %v955_v43 = vpop.eup %954 }
 0x2e1   :  { %v404_v44 = vpack.c.bf16 %v955_v43, %v955_v43 }
 0x2e3   :  { %884 = vmatmul.mubr.msk.bf16.vlgmr.msra.gmra.mxu1 %vm359_vm5, %v404_v44 }
 0x2e4   :  { %907 = vmatprep.mubr.msk.bf16.mxu1 %vm1160_vm1, %v1159_v2  ;;  %900 = vmatpush3.bf16.msra.mxu1 %v948_v47 }
 0x2e5   :  { %901 = vmatprep.subr.bf16.mxu1 %v1159_v2 }
 0x2e8   :  { %902 = vmatpush3.bf16.msra.mxu1 %v949_v48 }
 0x2e9   :  { %903 = vmatprep.subr.bf16.mxu1 %v1159_v2 }
 0x2ec   :  { %904 = vmatpush3.bf16.msra.mxu1 %v950_v60 }
 0x2ed   :  { %905 = vmatprep.subr.bf16.mxu1 %v1159_v2 }
 0x2f0   :  { %906 = vmatpush3.bf16.msra.mxu1 %v951_v61 }
 0x3a3   :  { %v481_v50 = vpop.f32.mrf.mxu1 }
 0x3a4   :  { %v482_v52 = vadd.f32 %v792_v49, %v481_v50 }
 0x3a5   :  { %v885_v53 = vpop.f32.mrf.mxu1 }
 0x3a6   :  { %vm487_vm6 = vcmp.ge.f32.partialorder %v482_v52, 0.0  ;;  %v489_v54 = vmul.f32 %v488_v51, %v482_v52 }
 0x3a7   :  { %v484_v55 = vpop.f32.mrf.mxu1 }
 0x3a8   :  { %v490_v56 = vsel %vm487_vm6, %v482_v52, %v489_v54 }
 0x3a9   :  { %v491_v57 = vadd.f32 %v490_v56, %v318_v27  ;;  %v886_v58 = vpop.f32.mrf.mxu1 }
 0x3ab   :  { %v492_v59 = vpack.c.bf16 %v491_v57, %v491_v57 }
 0x3ad   :  { %896 = vmatmul.mubr.msk.bf16.vlgmr.msra.gmra.mxu0 %vm359_vm5, %v492_v59 }
 0x3ae   :  { %915 = vmatprep.mubr.msk.bf16.mxu0 %vm1160_vm1, %v1159_v2  ;;  %912 = vmatpush3.bf16.msra.mxu0 %v952_v8 }
 0x3af   :  { %913 = vmatprep.subr.bf16.mxu0 %v1159_v2 }
 0x3b2   :  { %914 = vmatpush3.bf16.msra.mxu0 %v953_v9 }
 0x46d   :  { %v569_v63 = vpop.f32.mrf.mxu0 }
 0x46e   :  { %v570_v0 = vadd.f32 %v798_v62, %v569_v63 }
 0x46f   :  { %v897_v1 = vpop.f32.mrf.mxu0 }
 0x470   :  { %v575_v3 = vmax.f32 %v570_v0, 0.0 }
 0x471   :  { %v572_v4 = vpop.f32.mrf.mxu0 }
 0x472   :  { %v576_v5 = vadd.f32 %v955_v43, %v575_v3 }
 0x473   :  { %v898_v6 = vpop.f32.mrf.mxu0 }
 0x474   :  { %v577_v7 = vpack.c.bf16 %v576_v5, %v576_v5 }
 0x476   :  { %908 = vmatmul.mubr.msk.bf16.vlgmr.msra.gmra.mxu1 %vm359_vm5, %v577_v7 }
 0x536   :  { %v654_v11 = vpop.f32.mrf.mxu1 }
 0x537   :  { %v655_v13 = vadd.f32 %v804_v10, %v654_v11 }
 0x538   :  { %v909_v14 = vpop.f32.mrf.mxu1 }
 0x539   :  { %vm660_vm7 = vcmp.ge.f32.partialorder %v655_v13, 0.0  ;;  %v662_v15 = vmul.f32 %v661_v12, %v655_v13 }
 0x53a   :  { %v657_v16 = vpop.f32.mrf.mxu1 }
 0x53b   :  { %v663_v17 = vsel %vm660_vm7, %v655_v13, %v662_v15 }
 0x53c   :  { %v664_v2 = vadd.f32 %v663_v17, %v1315_v18  ;;  %v910_v19 = vpop.f32.mrf.mxu1  ;;  %v815_v18 = vld [vmem:[%s1415_s16] ss:$0 sm:$0xff] }
 0x53e   :  { %v665_v20 = vpack.c.bf16 %v664_v2, %v664_v2 }
 0x540   :  { %916 = vmatmul.mubr.msk.bf16.vlgmr.msra.gmra.mxu0 %vm274_vm4, %v665_v20 }
 0x600   :  { %v726_v22 = vpop.f32.mrf.mxu0 }
 0x601   :  { %v727_v23 = vadd.f32 %v810_v21, %v726_v22 }
 0x602   :  { %v917_v24 = vpop.f32.mrf.mxu0 }
 0x603   :  { %v814_v25 = vmul.f32 -1.442695, %v727_v23 }
 0x604   :  { %v729_v26 = vpop.f32.mrf.mxu0 }
 0x605   :  { %956 = vpow2.f32 %v814_v25 }
 0x606   :  { %v918_v27 = vpop.f32.mrf.mxu0 }
 0x612   :  { %v957_v28 = vpop.eup %956 }
 0x613   :  { %v735_v29 = vadd.f32 1.0, %v957_v28 }
 0x615   :  { %958 = vrcp.f32 %v735_v29 }
 0x622   :  { %v959_v30 = vpop.eup %958 }
 0x623   :  { %v745_v31 = vmul.f32 %v959_v30, %v815_v18 }
 0x625   :  { %v747_v32 = vsel %vm746_vm8, %v745_v31, 0.0 }
 0x626   :  { %748 = vadd.xlane.f32.xlu0 %v747_v32 }
 0x6af   :  { %v749_v34 = vpop.xlane.xlu0 %748 }
 0x6b0   :  { %v757_v35 = vadd.f32 %v816_v33, %v749_v34 }
 0x6b2   :  { %v817_v36 = vmul.f32 -1.442695, %v757_v35 }
 0x6b4   :  { %960 = vpow2.f32 %v817_v36 }
 0x6c1   :  { %v961_v37 = vpop.eup %960 }
 0x6c2   :  { %v761_v38 = vadd.f32 1.0, %v961_v37 }
 0x6c4   :  { %962 = vrcp.f32 %v761_v38 }
 0x6d1   :  { %v963_v39 = vpop.eup %962 }
 0x6d2   :  { %765 = vst.msk [vmem:[%s1417_s18] sm:$0xff] %vm764_vm9, %v963_v39 }
 0x6d3   :  { %770 = vsyncpa [#allocation4], 1 }
 0x6d4   :  { %771 = vsyncpa [#allocation8], 1 }
 0x6d5   :  { %772 = vsyncpa [#allocation11], 1 }
 0x6d6   :  { %773 = vsyncpa [#allocation14], 1 }
 0x6d7   :  { %774 = vsyncpa [#allocation17], 1 }
 0x6d8   :  { %775 = vsyncpa [#allocation5], 1 }

</bundles_post_ra>
